<compile_context>
chip_gen: v7x
topology: tpu7x:2x2x1
jax: 0.10.0
libtpu: 0.0.40
codegen_flags: <defaults>
</compile_context>

<pallas_src>
import functools

import jax
import jax.numpy as jnp
from jax.experimental import pallas as pl
from jax.experimental.pallas import tpu as pltpu

LANE = 128


def lstm_kernel(p_ref, x_ref, out_ref,
                long_ref, short_ref,
                a_fg_ref, a_ig_ref, a_in_ref, a_og_ref,
                *, tile_t, tail_len, unroll):
    """One (batch-tile, time-tile) grid step of the LSTM recurrence.

    p_ref   : SMEM (12,) f32  pre-scaled scalar parameters (scalar-prefetched)
    x_ref   : VMEM (tile_t, tile_g, 128) f32  time-major inputs for this tile
    out_ref : VMEM (tile_g, 128) f32  final short memory (flushed on last tile)
    long_ref/short_ref : VMEM (tile_g, 128) carries, resident across time tiles
    a_*_ref : VMEM (tile_t, tile_g, 128) precomputed gate pre-activations
    """
    t_idx = pl.program_id(1)
    last_t = pl.num_programs(1) - 1

    @pl.when(t_idx == 0)
    def _init():
        long_ref[...] = jnp.zeros_like(long_ref)
        short_ref[...] = jnp.zeros_like(short_ref)

    # ---- bulk pass: x-dependent half of each gate, off the critical path ----
    # a_g[t] = x[t]*w_g1 + b_g   (sigmoid-gate params already pre-scaled by 0.5)
    x_blk = x_ref[...]
    a_fg_ref[...] = x_blk * p_ref[1] + p_ref[2]
    a_ig_ref[...] = x_blk * p_ref[4] + p_ref[5]
    a_in_ref[...] = x_blk * p_ref[7] + p_ref[8]
    a_og_ref[...] = x_blk * p_ref[10] + p_ref[11]

    # ---- hoisted scalar->vreg splats (one broadcast per kernel invocation) ----
    cshape = long_ref.shape
    w_fg0 = jnp.full(cshape, p_ref[0], jnp.float32)
    w_ig0 = jnp.full(cshape, p_ref[3], jnp.float32)
    w_in0 = jnp.full(cshape, p_ref[6], jnp.float32)
    w_og0 = jnp.full(cshape, p_ref[9], jnp.float32)

    def run_steps(n_steps, n_unroll):
        def step(t, carry):
            long_m, short_m = carry
            # sigmoid(z) == 0.5*tanh(0.5*z) + 0.5; the inner 0.5 is folded into
            # the pre-scaled parameters, so each gate is one EUP tanh push.
            remember = 0.5 * jnp.tanh(short_m * w_fg0 + a_fg_ref[t]) + 0.5
            pot_long = jnp.tanh(short_m * w_in0 + a_in_ref[t])
            pot_pct = 0.5 * jnp.tanh(short_m * w_ig0 + a_ig_ref[t]) + 0.5
            new_long = long_m * remember + pot_long * pot_pct
            out_pct = 0.5 * jnp.tanh(short_m * w_og0 + a_og_ref[t]) + 0.5
            new_short = jnp.tanh(new_long) * out_pct
            return new_long, new_short

        carry = (long_ref[...], short_ref[...])
        new_long, new_short = jax.lax.fori_loop(0, n_steps, step, carry,
                                                unroll=n_unroll)
        long_ref[...] = new_long
        short_ref[...] = new_short

    if tail_len == tile_t:
        # No time padding anywhere: single branch-free loop.
        run_steps(tile_t, unroll)
    else:
        # Only the last time tile has padded steps; it runs a statically
        # shorter loop, every other tile runs the full-length loop (no selects).
        tail_unroll = unroll if isinstance(unroll, bool) else min(unroll, tail_len)

        @pl.when(t_idx != last_t)
        def _full():
            run_steps(tile_t, unroll)

        @pl.when(t_idx == last_t)
        def _tail():
            run_steps(tail_len, tail_unroll)

    @pl.when(t_idx == last_t)
    def _finish():
        out_ref[...] = short_ref[...]


def _prescale_params(params):
    """Fold the 0.5 from sigmoid(z)=0.5*tanh(0.5*z)+0.5 into the sigmoid-gate
    parameters (forget / input-percent / output gates). The tanh input-node
    parameters are left untouched. Scaling by 0.5 is exact in f32."""
    scale = jnp.array([0.5, 0.5, 0.5,   # forget gate
                       0.5, 0.5, 0.5,   # input gate %
                       1.0, 1.0, 1.0,   # input node (tanh)
                       0.5, 0.5, 0.5],  # output gate
                      jnp.float32)
    return params.astype(jnp.float32) * scale


def basic_lstm_forward(x, params):
    """x: (B, T) float; params: (12,) float -> (B, 1) float32."""
    x = x.astype(jnp.float32)
    p = _prescale_params(params)
    B, T = x.shape

    # ---- batch tiling: lane-dense (tile_g sublanes x 128 lanes) tiles ----
    g_needed = pl.cdiv(B, LANE)
    if g_needed <= 8:
        tile_g = g_needed                              # small B: minimal padding
    else:
        tile_g = min(32, pl.cdiv(g_needed, 8) * 8)     # up to 4 f32 vregs / temp
    b_pad = pl.cdiv(B, LANE * tile_g) * (LANE * tile_g)
    num_bt = b_pad // (LANE * tile_g)

    # ---- time tiling: streamed grid axis ----
    if T <= 256:
        tile_t = T                                     # whole sequence resident
        unroll = True if T <= 64 else 8
    else:
        tile_t = 256 if T >= 1024 else 128             # amortize per-step overhead
        unroll = 8
    num_tt = pl.cdiv(T, tile_t)
    t_pad = num_tt * tile_t
    tail_len = T - (num_tt - 1) * tile_t               # static tail length

    # Contiguous per-block host layout:
    # (B, T) -> pad -> (num_bt, tile_g, LANE, t_pad) -> (num_bt, t_pad, tile_g, LANE)
    # so each (tile_t, tile_g, LANE) DMA block is one contiguous slab.
    # (Note: this pad+transpose is one extra HBM pass done by XLA outside the kernel.)
    x_p = jnp.zeros((b_pad, t_pad), jnp.float32).at[:B, :T].set(x)
    x_tiles = x_p.reshape(num_bt, tile_g, LANE, t_pad).transpose(0, 3, 1, 2)

    kernel = functools.partial(lstm_kernel, tile_t=tile_t, tail_len=tail_len,
                               unroll=unroll)

    # VMEM budget: 2x input buffer + 4 gate scratch + carries/output.
    tile_bytes = tile_t * tile_g * LANE * 4
    vmem_bytes = 6 * tile_bytes + 8 * tile_g * LANE * 4
    vmem_limit = min(max(int(vmem_bytes * 3 // 2) + (8 << 20), 32 << 20), 60 << 20)

    out = pl.pallas_call(
        kernel,
        out_shape=jax.ShapeDtypeStruct((num_bt, tile_g, LANE), jnp.float32),
        grid_spec=pltpu.PrefetchScalarGridSpec(
            num_scalar_prefetch=1,                     # params -> SMEM
            grid=(num_bt, num_tt),                     # batch parallel, time streamed
            in_specs=[
                pl.BlockSpec((None, tile_t, tile_g, LANE),
                             lambda b, t, p: (b, t, 0, 0)),
            ],
            out_specs=pl.BlockSpec((None, tile_g, LANE),
                                   lambda b, t, p: (b, 0, 0)),
            scratch_shapes=[
                pltpu.VMEM((tile_g, LANE), jnp.float32),           # long carry
                pltpu.VMEM((tile_g, LANE), jnp.float32),           # short carry
                pltpu.VMEM((tile_t, tile_g, LANE), jnp.float32),   # a_fg
                pltpu.VMEM((tile_t, tile_g, LANE), jnp.float32),   # a_ig
                pltpu.VMEM((tile_t, tile_g, LANE), jnp.float32),   # a_in
                pltpu.VMEM((tile_t, tile_g, LANE), jnp.float32),   # a_og
            ],
        ),
        # TODO(synk): on v7x, shard the batch axis across the 2 TensorCores with
        # pltpu.CORE_PARALLEL behind a chip-version check; "parallel" is the
        # portable single-TC-safe choice used here.
        compiler_params=pltpu.CompilerParams(
            dimension_semantics=("parallel", "arbitrary"),
            vmem_limit_bytes=vmem_limit),
    )(p, x_tiles)

    # Lane-dense (num_bt, tile_g, 128) result -> (B, 1), dropping padded lanes.
    return out.reshape(b_pad, 1)[:B]


def basic_lstm_reference(x, params):
    """Pure-JAX reference replicating the PyTorch loop semantics (unscaled params)."""
    (w_fg0, w_fg1, b_fg0,
     w_ig0, w_ig1, b_ig0,
     w_in0, w_in1, b_in0,
     w_og0, w_og1, b_og0) = [params[i] for i in range(12)]

    def unit(inp, long_m, short_m):
        remember = jax.nn.sigmoid(short_m * w_fg0 + inp * w_fg1 + b_fg0)
        pot_long = jnp.tanh(short_m * w_in0 + inp * w_in1 + b_in0)
        pot_long_pct = jax.nn.sigmoid(short_m * w_ig0 + inp * w_ig1 + b_ig0)
        new_long = long_m * remember + pot_long * pot_long_pct
        pot_short = jnp.tanh(new_long)
        pot_short_pct = jax.nn.sigmoid(short_m * w_og0 + inp * w_og1 + b_og0)
        return new_long, pot_short * pot_short_pct

    def scan_seq(seq):
        def body(carry, x_t):
            lm, sm = carry
            lm, sm = unit(x_t, lm, sm)
            return (lm, sm), None
        (_, sm), _ = jax.lax.scan(body, (jnp.float32(0.0), jnp.float32(0.0)),
                                  seq)
        return sm

    return jax.vmap(scan_seq)(x.astype(jnp.float32))[:, None]


if __name__ == "__main__":
    key = jax.random.PRNGKey(0)
    k_params, k_x1, k_x2 = jax.random.split(key, 3)

    # 12 scalar parameters (weights ~ N(0,1), biases 0.0), matching __init__.
    w = jax.random.normal(k_params, (8,), dtype=jnp.float32)
    params = jnp.array(
        [w[0], w[1], 0.0,   # forget gate:  w_fg0, w_fg1, b_fg0
         w[2], w[3], 0.0,   # input gate %: w_ig0, w_ig1, b_ig0
         w[4], w[5], 0.0,   # input node:   w_in0, w_in1, b_in0
         w[6], w[7], 0.0],  # output gate:  w_og0, w_og1, b_og0
        dtype=jnp.float32,
    )

    # Primary small case matching the module's (batch, seq) input.
    batch, seq_len = 2, 8
    x = jax.random.normal(k_x1, (batch, seq_len), dtype=jnp.float32)
    out = jax.block_until_ready(basic_lstm_forward(x, params))
    ref = jax.block_until_ready(basic_lstm_reference(x, params))
    assert out.shape == (batch, 1) and out.dtype == jnp.float32
    assert jnp.allclose(out, ref, atol=1e-4, rtol=1e-4)

    # Secondary case exercising batch-lane padding and the resident-time path.
    batch2, seq_len2 = 200, 70
    x2 = jax.random.normal(k_x2, (batch2, seq_len2), dtype=jnp.float32)
    out2 = jax.block_until_ready(basic_lstm_forward(x2, params))
    ref2 = jax.block_until_ready(basic_lstm_reference(x2, params))
    assert out2.shape == (batch2, 1)
    assert jnp.allclose(out2, ref2, atol=1e-4, rtol=1e-4)

    print("KERNEL_OK")
</pallas_src>

<mosaic_0001>
module attributes {stable_mosaic.version = 11 : i64} {
  func.func @lstm_kernel(%arg0: i32, %arg1: i32, %arg2: memref<12xf32, #tpu.memory_space<smem>>, %arg3: memref<1x8x1x128xf32, #tpu.memory_space<vmem>>, %arg4: memref<1x1x128xf32, #tpu.memory_space<vmem>>, %arg5: memref<1x128xf32, #tpu.memory_space<vmem>>, %arg6: memref<1x128xf32, #tpu.memory_space<vmem>>, %arg7: memref<8x1x128xf32, #tpu.memory_space<vmem>>, %arg8: memref<8x1x128xf32, #tpu.memory_space<vmem>>, %arg9: memref<8x1x128xf32, #tpu.memory_space<vmem>>, %arg10: memref<8x1x128xf32, #tpu.memory_space<vmem>>) attributes {dimension_semantics = [#tpu.dimension_semantics<parallel>, #tpu.dimension_semantics<arbitrary>], iteration_bounds = array<i64: 1, 1>, scalar_prefetch = 1 : i64, scratch_operands = 6 : i64, tpu.core_type = #tpu.core_type<tc>, window_params = [{transform_indices = @transform_0, window_bounds = array<i64: 1, 8, 1, 128>}, {transform_indices = @transform_1, window_bounds = array<i64: 1, 1, 128>}]} {
    %c0_i32 = arith.constant 0 : i32
    %0 = arith.cmpi eq, %arg1, %c0_i32 : i32
    %1 = arith.extui %0 : i1 to i32
    %c0_i32_0 = arith.constant 0 : i32
    %2 = arith.cmpi ne, %1, %c0_i32_0 : i32
    scf.if %2 {
      %cst_139 = arith.constant 0.000000e+00 : f32
      %376 = vector.broadcast %cst_139 : f32 to vector<1x128xf32>
      %c0_140 = arith.constant 0 : index
      %c0_141 = arith.constant 0 : index
      %377 = vector.load %arg5[%c0_140, %c0_141] : memref<1x128xf32, #tpu.memory_space<vmem>>, vector<1x128xf32>
      tpu.vector_store %arg5[%c0_140, %c0_141], %376 {strides = array<i32>} : memref<1x128xf32, #tpu.memory_space<vmem>>, vector<1x128xf32>,
      %cst_142 = arith.constant 0.000000e+00 : f32
      %378 = vector.broadcast %cst_142 : f32 to vector<1x128xf32>
      %c0_143 = arith.constant 0 : index
      %c0_144 = arith.constant 0 : index
      %379 = vector.load %arg6[%c0_143, %c0_144] : memref<1x128xf32, #tpu.memory_space<vmem>>, vector<1x128xf32>
      tpu.vector_store %arg6[%c0_143, %c0_144], %378 {strides = array<i32>} : memref<1x128xf32, #tpu.memory_space<vmem>>, vector<1x128xf32>,
    } else {
    }
    %c0 = arith.constant 0 : index
    %c0_1 = arith.constant 0 : index
    %c0_2 = arith.constant 0 : index
    %c0_3 = arith.constant 0 : index
    %3 = vector.load %arg3[%c0, %c0_1, %c0_2, %c0_3] : memref<1x8x1x128xf32, #tpu.memory_space<vmem>>, vector<1x8x1x128xf32>
    %4 = vector.shape_cast %3 : vector<1x8x1x128xf32> to vector<8x1x128xf32>
    %c1 = arith.constant 1 : index
    %5 = memref.load %arg2[%c1] : memref<12xf32, #tpu.memory_space<smem>>
    %6 = vector.broadcast %5 : f32 to vector<8x1x128xf32>
    %7 = arith.mulf %4, %6 : vector<8x1x128xf32>
    %c2 = arith.constant 2 : index
    %8 = memref.load %arg2[%c2] : memref<12xf32, #tpu.memory_space<smem>>
    %9 = vector.broadcast %8 : f32 to vector<8x1x128xf32>
    %10 = arith.addf %7, %9 : vector<8x1x128xf32>
    %c0_4 = arith.constant 0 : index
    %c0_5 = arith.constant 0 : index
    %c0_6 = arith.constant 0 : index
    %11 = vector.load %arg7[%c0_4, %c0_5, %c0_6] : memref<8x1x128xf32, #tpu.memory_space<vmem>>, vector<8x1x128xf32>
    tpu.vector_store %arg7[%c0_4, %c0_5, %c0_6], %10 {strides = array<i32>} : memref<8x1x128xf32, #tpu.memory_space<vmem>>, vector<8x1x128xf32>,
    %c4 = arith.constant 4 : index
    %12 = memref.load %arg2[%c4] : memref<12xf32, #tpu.memory_space<smem>>
    %13 = vector.broadcast %12 : f32 to vector<8x1x128xf32>
    %14 = arith.mulf %4, %13 : vector<8x1x128xf32>
    %c5 = arith.constant 5 : index
    %15 = memref.load %arg2[%c5] : memref<12xf32, #tpu.memory_space<smem>>
    %16 = vector.broadcast %15 : f32 to vector<8x1x128xf32>
    %17 = arith.addf %14, %16 : vector<8x1x128xf32>
    %c0_7 = arith.constant 0 : index
    %c0_8 = arith.constant 0 : index
    %c0_9 = arith.constant 0 : index
    %18 = vector.load %arg8[%c0_7, %c0_8, %c0_9] : memref<8x1x128xf32, #tpu.memory_space<vmem>>, vector<8x1x128xf32>
    tpu.vector_store %arg8[%c0_7, %c0_8, %c0_9], %17 {strides = array<i32>} : memref<8x1x128xf32, #tpu.memory_space<vmem>>, vector<8x1x128xf32>,
    %c7 = arith.constant 7 : index
    %19 = memref.load %arg2[%c7] : memref<12xf32, #tpu.memory_space<smem>>
    %20 = vector.broadcast %19 : f32 to vector<8x1x128xf32>
    %21 = arith.mulf %4, %20 : vector<8x1x128xf32>
    %c8 = arith.constant 8 : index
    %22 = memref.load %arg2[%c8] : memref<12xf32, #tpu.memory_space<smem>>
    %23 = vector.broadcast %22 : f32 to vector<8x1x128xf32>
    %24 = arith.addf %21, %23 : vector<8x1x128xf32>
    %c0_10 = arith.constant 0 : index
    %c0_11 = arith.constant 0 : index
    %c0_12 = arith.constant 0 : index
    %25 = vector.load %arg9[%c0_10, %c0_11, %c0_12] : memref<8x1x128xf32, #tpu.memory_space<vmem>>, vector<8x1x128xf32>
    tpu.vector_store %arg9[%c0_10, %c0_11, %c0_12], %24 {strides = array<i32>} : memref<8x1x128xf32, #tpu.memory_space<vmem>>, vector<8x1x128xf32>,
    %c10 = arith.constant 10 : index
    %26 = memref.load %arg2[%c10] : memref<12xf32, #tpu.memory_space<smem>>
    %27 = vector.broadcast %26 : f32 to vector<8x1x128xf32>
    %28 = arith.mulf %4, %27 : vector<8x1x128xf32>
    %c11 = arith.constant 11 : index
    %29 = memref.load %arg2[%c11] : memref<12xf32, #tpu.memory_space<smem>>
    %30 = vector.broadcast %29 : f32 to vector<8x1x128xf32>
    %31 = arith.addf %28, %30 : vector<8x1x128xf32>
    %c0_13 = arith.constant 0 : index
    %c0_14 = arith.constant 0 : index
    %c0_15 = arith.constant 0 : index
    %32 = vector.load %arg10[%c0_13, %c0_14, %c0_15] : memref<8x1x128xf32, #tpu.memory_space<vmem>>, vector<8x1x128xf32>
    tpu.vector_store %arg10[%c0_13, %c0_14, %c0_15], %31 {strides = array<i32>} : memref<8x1x128xf32, #tpu.memory_space<vmem>>, vector<8x1x128xf32>,
    %c0_16 = arith.constant 0 : index
    %33 = memref.load %arg2[%c0_16] : memref<12xf32, #tpu.memory_space<smem>>
    %34 = vector.broadcast %33 : f32 to vector<1x128xf32>
    %c3 = arith.constant 3 : index
    %35 = memref.load %arg2[%c3] : memref<12xf32, #tpu.memory_space<smem>>
    %36 = vector.broadcast %35 : f32 to vector<1x128xf32>
    %c6 = arith.constant 6 : index
    %37 = memref.load %arg2[%c6] : memref<12xf32, #tpu.memory_space<smem>>
    %38 = vector.broadcast %37 : f32 to vector<1x128xf32>
    %c9 = arith.constant 9 : index
    %39 = memref.load %arg2[%c9] : memref<12xf32, #tpu.memory_space<smem>>
    %40 = vector.broadcast %39 : f32 to vector<1x128xf32>
    %c0_17 = arith.constant 0 : index
    %c0_18 = arith.constant 0 : index
    %41 = vector.load %arg5[%c0_17, %c0_18] : memref<1x128xf32, #tpu.memory_space<vmem>>, vector<1x128xf32>
    %c0_19 = arith.constant 0 : index
    %c0_20 = arith.constant 0 : index
    %42 = vector.load %arg6[%c0_19, %c0_20] : memref<1x128xf32, #tpu.memory_space<vmem>>, vector<1x128xf32>
    %c0_i32_21 = arith.constant 0 : i32
    %43 = arith.mulf %42, %34 : vector<1x128xf32>
    %44 = arith.index_cast %c0_i32_21 : i32 to index
    %c0_22 = arith.constant 0 : index
    %c0_23 = arith.constant 0 : index
    %45 = vector.load %arg7[%44, %c0_22, %c0_23] : memref<8x1x128xf32, #tpu.memory_space<vmem>>, vector<1x1x128xf32>
    %46 = vector.shape_cast %45 : vector<1x1x128xf32> to vector<1x128xf32>
    %47 = arith.addf %43, %46 : vector<1x128xf32>
    %48 = math.tanh %47 : vector<1x128xf32>
    %cst = arith.constant 5.000000e-01 : f32
    %49 = vector.broadcast %cst : f32 to vector<1x128xf32>
    %50 = arith.mulf %49, %48 : vector<1x128xf32>
    %cst_24 = arith.constant 5.000000e-01 : f32
    %51 = vector.broadcast %cst_24 : f32 to vector<1x128xf32>
    %52 = arith.addf %50, %51 : vector<1x128xf32>
    %53 = arith.mulf %42, %38 : vector<1x128xf32>
    %54 = arith.index_cast %c0_i32_21 : i32 to index
    %c0_25 = arith.constant 0 : index
    %c0_26 = arith.constant 0 : index
    %55 = vector.load %arg9[%54, %c0_25, %c0_26] : memref<8x1x128xf32, #tpu.memory_space<vmem>>, vector<1x1x128xf32>
    %56 = vector.shape_cast %55 : vector<1x1x128xf32> to vector<1x128xf32>
    %57 = arith.addf %53, %56 : vector<1x128xf32>
    %58 = math.tanh %57 : vector<1x128xf32>
    %59 = arith.mulf %42, %36 : vector<1x128xf32>
    %60 = arith.index_cast %c0_i32_21 : i32 to index
    %c0_27 = arith.constant 0 : index
    %c0_28 = arith.constant 0 : index
    %61 = vector.load %arg8[%60, %c0_27, %c0_28] : memref<8x1x128xf32, #tpu.memory_space<vmem>>, vector<1x1x128xf32>
    %62 = vector.shape_cast %61 : vector<1x1x128xf32> to vector<1x128xf32>
    %63 = arith.addf %59, %62 : vector<1x128xf32>
    %64 = math.tanh %63 : vector<1x128xf32>
    %cst_29 = arith.constant 5.000000e-01 : f32
    %65 = vector.broadcast %cst_29 : f32 to vector<1x128xf32>
    %66 = arith.mulf %65, %64 : vector<1x128xf32>
    %cst_30 = arith.constant 5.000000e-01 : f32
    %67 = vector.broadcast %cst_30 : f32 to vector<1x128xf32>
    %68 = arith.addf %66, %67 : vector<1x128xf32>
    %69 = arith.mulf %41, %52 : vector<1x128xf32>
    %70 = arith.mulf %58, %68 : vector<1x128xf32>
    %71 = arith.addf %69, %70 : vector<1x128xf32>
    %72 = arith.mulf %42, %40 : vector<1x128xf32>
    %73 = arith.index_cast %c0_i32_21 : i32 to index
    %c0_31 = arith.constant 0 : index
    %c0_32 = arith.constant 0 : index
    %74 = vector.load %arg10[%73, %c0_31, %c0_32] : memref<8x1x128xf32, #tpu.memory_space<vmem>>, vector<1x1x128xf32>
    %75 = vector.shape_cast %74 : vector<1x1x128xf32> to vector<1x128xf32>
    %76 = arith.addf %72, %75 : vector<1x128xf32>
    %77 = math.tanh %76 : vector<1x128xf32>
    %cst_33 = arith.constant 5.000000e-01 : f32
    %78 = vector.broadcast %cst_33 : f32 to vector<1x128xf32>
    %79 = arith.mulf %78, %77 : vector<1x128xf32>
    %cst_34 = arith.constant 5.000000e-01 : f32
    %80 = vector.broadcast %cst_34 : f32 to vector<1x128xf32>
    %81 = arith.addf %79, %80 : vector<1x128xf32>
    %82 = math.tanh %71 : vector<1x128xf32>
    %83 = arith.mulf %82, %81 : vector<1x128xf32>
    %c1_i32 = arith.constant 1 : i32
    %84 = arith.mulf %83, %34 : vector<1x128xf32>
    %85 = arith.index_cast %c1_i32 : i32 to index
    %c0_35 = arith.constant 0 : index
    %c0_36 = arith.constant 0 : index
    %86 = vector.load %arg7[%85, %c0_35, %c0_36] : memref<8x1x128xf32, #tpu.memory_space<vmem>>, vector<1x1x128xf32>
    %87 = vector.shape_cast %86 : vector<1x1x128xf32> to vector<1x128xf32>
    %88 = arith.addf %84, %87 : vector<1x128xf32>
    %89 = math.tanh %88 : vector<1x128xf32>
    %cst_37 = arith.constant 5.000000e-01 : f32
    %90 = vector.broadcast %cst_37 : f32 to vector<1x128xf32>
    %91 = arith.mulf %90, %89 : vector<1x128xf32>
    %cst_38 = arith.constant 5.000000e-01 : f32
    %92 = vector.broadcast %cst_38 : f32 to vector<1x128xf32>
    %93 = arith.addf %91, %92 : vector<1x128xf32>
    %94 = arith.mulf %83, %38 : vector<1x128xf32>
    %95 = arith.index_cast %c1_i32 : i32 to index
    %c0_39 = arith.constant 0 : index
    %c0_40 = arith.constant 0 : index
    %96 = vector.load %arg9[%95, %c0_39, %c0_40] : memref<8x1x128xf32, #tpu.memory_space<vmem>>, vector<1x1x128xf32>
    %97 = vector.shape_cast %96 : vector<1x1x128xf32> to vector<1x128xf32>
    %98 = arith.addf %94, %97 : vector<1x128xf32>
    %99 = math.tanh %98 : vector<1x128xf32>
    %100 = arith.mulf %83, %36 : vector<1x128xf32>
    %101 = arith.index_cast %c1_i32 : i32 to index
    %c0_41 = arith.constant 0 : index
    %c0_42 = arith.constant 0 : index
    %102 = vector.load %arg8[%101, %c0_41, %c0_42] : memref<8x1x128xf32, #tpu.memory_space<vmem>>, vector<1x1x128xf32>
    %103 = vector.shape_cast %102 : vector<1x1x128xf32> to vector<1x128xf32>
    %104 = arith.addf %100, %103 : vector<1x128xf32>
    %105 = math.tanh %104 : vector<1x128xf32>
    %cst_43 = arith.constant 5.000000e-01 : f32
    %106 = vector.broadcast %cst_43 : f32 to vector<1x128xf32>
    %107 = arith.mulf %106, %105 : vector<1x128xf32>
    %cst_44 = arith.constant 5.000000e-01 : f32
    %108 = vector.broadcast %cst_44 : f32 to vector<1x128xf32>
    %109 = arith.addf %107, %108 : vector<1x128xf32>
    %110 = arith.mulf %71, %93 : vector<1x128xf32>
    %111 = arith.mulf %99, %109 : vector<1x128xf32>
    %112 = arith.addf %110, %111 : vector<1x128xf32>
    %113 = arith.mulf %83, %40 : vector<1x128xf32>
    %114 = arith.index_cast %c1_i32 : i32 to index
    %c0_45 = arith.constant 0 : index
    %c0_46 = arith.constant 0 : index
    %115 = vector.load %arg10[%114, %c0_45, %c0_46] : memref<8x1x128xf32, #tpu.memory_space<vmem>>, vector<1x1x128xf32>
    %116 = vector.shape_cast %115 : vector<1x1x128xf32> to vector<1x128xf32>
    %117 = arith.addf %113, %116 : vector<1x128xf32>
    %118 = math.tanh %117 : vector<1x128xf32>
    %cst_47 = arith.constant 5.000000e-01 : f32
    %119 = vector.broadcast %cst_47 : f32 to vector<1x128xf32>
    %120 = arith.mulf %119, %118 : vector<1x128xf32>
    %cst_48 = arith.constant 5.000000e-01 : f32
    %121 = vector.broadcast %cst_48 : f32 to vector<1x128xf32>
    %122 = arith.addf %120, %121 : vector<1x128xf32>
    %123 = math.tanh %112 : vector<1x128xf32>
    %124 = arith.mulf %123, %122 : vector<1x128xf32>
    %c2_i32 = arith.constant 2 : i32
    %125 = arith.mulf %124, %34 : vector<1x128xf32>
    %126 = arith.index_cast %c2_i32 : i32 to index
    %c0_49 = arith.constant 0 : index
    %c0_50 = arith.constant 0 : index
    %127 = vector.load %arg7[%126, %c0_49, %c0_50] : memref<8x1x128xf32, #tpu.memory_space<vmem>>, vector<1x1x128xf32>
    %128 = vector.shape_cast %127 : vector<1x1x128xf32> to vector<1x128xf32>
    %129 = arith.addf %125, %128 : vector<1x128xf32>
    %130 = math.tanh %129 : vector<1x128xf32>
    %cst_51 = arith.constant 5.000000e-01 : f32
    %131 = vector.broadcast %cst_51 : f32 to vector<1x128xf32>
    %132 = arith.mulf %131, %130 : vector<1x128xf32>
    %cst_52 = arith.constant 5.000000e-01 : f32
    %133 = vector.broadcast %cst_52 : f32 to vector<1x128xf32>
    %134 = arith.addf %132, %133 : vector<1x128xf32>
    %135 = arith.mulf %124, %38 : vector<1x128xf32>
    %136 = arith.index_cast %c2_i32 : i32 to index
    %c0_53 = arith.constant 0 : index
    %c0_54 = arith.constant 0 : index
    %137 = vector.load %arg9[%136, %c0_53, %c0_54] : memref<8x1x128xf32, #tpu.memory_space<vmem>>, vector<1x1x128xf32>
    %138 = vector.shape_cast %137 : vector<1x1x128xf32> to vector<1x128xf32>
    %139 = arith.addf %135, %138 : vector<1x128xf32>
    %140 = math.tanh %139 : vector<1x128xf32>
    %141 = arith.mulf %124, %36 : vector<1x128xf32>
    %142 = arith.index_cast %c2_i32 : i32 to index
    %c0_55 = arith.constant 0 : index
    %c0_56 = arith.constant 0 : index
    %143 = vector.load %arg8[%142, %c0_55, %c0_56] : memref<8x1x128xf32, #tpu.memory_space<vmem>>, vector<1x1x128xf32>
    %144 = vector.shape_cast %143 : vector<1x1x128xf32> to vector<1x128xf32>
    %145 = arith.addf %141, %144 : vector<1x128xf32>
    %146 = math.tanh %145 : vector<1x128xf32>
    %cst_57 = arith.constant 5.000000e-01 : f32
    %147 = vector.broadcast %cst_57 : f32 to vector<1x128xf32>
    %148 = arith.mulf %147, %146 : vector<1x128xf32>
    %cst_58 = arith.constant 5.000000e-01 : f32
    %149 = vector.broadcast %cst_58 : f32 to vector<1x128xf32>
    %150 = arith.addf %148, %149 : vector<1x128xf32>
    %151 = arith.mulf %112, %134 : vector<1x128xf32>
    %152 = arith.mulf %140, %150 : vector<1x128xf32>
    %153 = arith.addf %151, %152 : vector<1x128xf32>
    %154 = arith.mulf %124, %40 : vector<1x128xf32>
    %155 = arith.index_cast %c2_i32 : i32 to index
    %c0_59 = arith.constant 0 : index
    %c0_60 = arith.constant 0 : index
    %156 = vector.load %arg10[%155, %c0_59, %c0_60] : memref<8x1x128xf32, #tpu.memory_space<vmem>>, vector<1x1x128xf32>
    %157 = vector.shape_cast %156 : vector<1x1x128xf32> to vector<1x128xf32>
    %158 = arith.addf %154, %157 : vector<1x128xf32>
    %159 = math.tanh %158 : vector<1x128xf32>
    %cst_61 = arith.constant 5.000000e-01 : f32
    %160 = vector.broadcast %cst_61 : f32 to vector<1x128xf32>
    %161 = arith.mulf %160, %159 : vector<1x128xf32>
    %cst_62 = arith.constant 5.000000e-01 : f32
    %162 = vector.broadcast %cst_62 : f32 to vector<1x128xf32>
    %163 = arith.addf %161, %162 : vector<1x128xf32>
    %164 = math.tanh %153 : vector<1x128xf32>
    %165 = arith.mulf %164, %163 : vector<1x128xf32>
    %c3_i32 = arith.constant 3 : i32
    %166 = arith.mulf %165, %34 : vector<1x128xf32>
    %167 = arith.index_cast %c3_i32 : i32 to index
    %c0_63 = arith.constant 0 : index
    %c0_64 = arith.constant 0 : index
    %168 = vector.load %arg7[%167, %c0_63, %c0_64] : memref<8x1x128xf32, #tpu.memory_space<vmem>>, vector<1x1x128xf32>
    %169 = vector.shape_cast %168 : vector<1x1x128xf32> to vector<1x128xf32>
    %170 = arith.addf %166, %169 : vector<1x128xf32>
    %171 = math.tanh %170 : vector<1x128xf32>
    %cst_65 = arith.constant 5.000000e-01 : f32
    %172 = vector.broadcast %cst_65 : f32 to vector<1x128xf32>
    %173 = arith.mulf %172, %171 : vector<1x128xf32>
    %cst_66 = arith.constant 5.000000e-01 : f32
    %174 = vector.broadcast %cst_66 : f32 to vector<1x128xf32>
    %175 = arith.addf %173, %174 : vector<1x128xf32>
    %176 = arith.mulf %165, %38 : vector<1x128xf32>
    %177 = arith.index_cast %c3_i32 : i32 to index
    %c0_67 = arith.constant 0 : index
    %c0_68 = arith.constant 0 : index
    %178 = vector.load %arg9[%177, %c0_67, %c0_68] : memref<8x1x128xf32, #tpu.memory_space<vmem>>, vector<1x1x128xf32>
    %179 = vector.shape_cast %178 : vector<1x1x128xf32> to vector<1x128xf32>
    %180 = arith.addf %176, %179 : vector<1x128xf32>
    %181 = math.tanh %180 : vector<1x128xf32>
    %182 = arith.mulf %165, %36 : vector<1x128xf32>
    %183 = arith.index_cast %c3_i32 : i32 to index
    %c0_69 = arith.constant 0 : index
    %c0_70 = arith.constant 0 : index
    %184 = vector.load %arg8[%183, %c0_69, %c0_70] : memref<8x1x128xf32, #tpu.memory_space<vmem>>, vector<1x1x128xf32>
    %185 = vector.shape_cast %184 : vector<1x1x128xf32> to vector<1x128xf32>
    %186 = arith.addf %182, %185 : vector<1x128xf32>
    %187 = math.tanh %186 : vector<1x128xf32>
    %cst_71 = arith.constant 5.000000e-01 : f32
    %188 = vector.broadcast %cst_71 : f32 to vector<1x128xf32>
    %189 = arith.mulf %188, %187 : vector<1x128xf32>
    %cst_72 = arith.constant 5.000000e-01 : f32
    %190 = vector.broadcast %cst_72 : f32 to vector<1x128xf32>
    %191 = arith.addf %189, %190 : vector<1x128xf32>
    %192 = arith.mulf %153, %175 : vector<1x128xf32>
    %193 = arith.mulf %181, %191 : vector<1x128xf32>
    %194 = arith.addf %192, %193 : vector<1x128xf32>
    %195 = arith.mulf %165, %40 : vector<1x128xf32>
    %196 = arith.index_cast %c3_i32 : i32 to index
    %c0_73 = arith.constant 0 : index
    %c0_74 = arith.constant 0 : index
    %197 = vector.load %arg10[%196, %c0_73, %c0_74] : memref<8x1x128xf32, #tpu.memory_space<vmem>>, vector<1x1x128xf32>
    %198 = vector.shape_cast %197 : vector<1x1x128xf32> to vector<1x128xf32>
    %199 = arith.addf %195, %198 : vector<1x128xf32>
    %200 = math.tanh %199 : vector<1x128xf32>
    %cst_75 = arith.constant 5.000000e-01 : f32
    %201 = vector.broadcast %cst_75 : f32 to vector<1x128xf32>
    %202 = arith.mulf %201, %200 : vector<1x128xf32>
    %cst_76 = arith.constant 5.000000e-01 : f32
    %203 = vector.broadcast %cst_76 : f32 to vector<1x128xf32>
    %204 = arith.addf %202, %203 : vector<1x128xf32>
    %205 = math.tanh %194 : vector<1x128xf32>
    %206 = arith.mulf %205, %204 : vector<1x128xf32>
    %c4_i32 = arith.constant 4 : i32
    %207 = arith.mulf %206, %34 : vector<1x128xf32>
    %208 = arith.index_cast %c4_i32 : i32 to index
    %c0_77 = arith.constant 0 : index
    %c0_78 = arith.constant 0 : index
    %209 = vector.load %arg7[%208, %c0_77, %c0_78] : memref<8x1x128xf32, #tpu.memory_space<vmem>>, vector<1x1x128xf32>
    %210 = vector.shape_cast %209 : vector<1x1x128xf32> to vector<1x128xf32>
    %211 = arith.addf %207, %210 : vector<1x128xf32>
    %212 = math.tanh %211 : vector<1x128xf32>
    %cst_79 = arith.constant 5.000000e-01 : f32
    %213 = vector.broadcast %cst_79 : f32 to vector<1x128xf32>
    %214 = arith.mulf %213, %212 : vector<1x128xf32>
    %cst_80 = arith.constant 5.000000e-01 : f32
    %215 = vector.broadcast %cst_80 : f32 to vector<1x128xf32>
    %216 = arith.addf %214, %215 : vector<1x128xf32>
    %217 = arith.mulf %206, %38 : vector<1x128xf32>
    %218 = arith.index_cast %c4_i32 : i32 to index
    %c0_81 = arith.constant 0 : index
    %c0_82 = arith.constant 0 : index
    %219 = vector.load %arg9[%218, %c0_81, %c0_82] : memref<8x1x128xf32, #tpu.memory_space<vmem>>, vector<1x1x128xf32>
    %220 = vector.shape_cast %219 : vector<1x1x128xf32> to vector<1x128xf32>
    %221 = arith.addf %217, %220 : vector<1x128xf32>
    %222 = math.tanh %221 : vector<1x128xf32>
    %223 = arith.mulf %206, %36 : vector<1x128xf32>
    %224 = arith.index_cast %c4_i32 : i32 to index
    %c0_83 = arith.constant 0 : index
    %c0_84 = arith.constant 0 : index
    %225 = vector.load %arg8[%224, %c0_83, %c0_84] : memref<8x1x128xf32, #tpu.memory_space<vmem>>, vector<1x1x128xf32>
    %226 = vector.shape_cast %225 : vector<1x1x128xf32> to vector<1x128xf32>
    %227 = arith.addf %223, %226 : vector<1x128xf32>
    %228 = math.tanh %227 : vector<1x128xf32>
    %cst_85 = arith.constant 5.000000e-01 : f32
    %229 = vector.broadcast %cst_85 : f32 to vector<1x128xf32>
    %230 = arith.mulf %229, %228 : vector<1x128xf32>
    %cst_86 = arith.constant 5.000000e-01 : f32
    %231 = vector.broadcast %cst_86 : f32 to vector<1x128xf32>
    %232 = arith.addf %230, %231 : vector<1x128xf32>
    %233 = arith.mulf %194, %216 : vector<1x128xf32>
    %234 = arith.mulf %222, %232 : vector<1x128xf32>
    %235 = arith.addf %233, %234 : vector<1x128xf32>
    %236 = arith.mulf %206, %40 : vector<1x128xf32>
    %237 = arith.index_cast %c4_i32 : i32 to index
    %c0_87 = arith.constant 0 : index
    %c0_88 = arith.constant 0 : index
    %238 = vector.load %arg10[%237, %c0_87, %c0_88] : memref<8x1x128xf32, #tpu.memory_space<vmem>>, vector<1x1x128xf32>
    %239 = vector.shape_cast %238 : vector<1x1x128xf32> to vector<1x128xf32>
    %240 = arith.addf %236, %239 : vector<1x128xf32>
    %241 = math.tanh %240 : vector<1x128xf32>
    %cst_89 = arith.constant 5.000000e-01 : f32
    %242 = vector.broadcast %cst_89 : f32 to vector<1x128xf32>
    %243 = arith.mulf %242, %241 : vector<1x128xf32>
    %cst_90 = arith.constant 5.000000e-01 : f32
    %244 = vector.broadcast %cst_90 : f32 to vector<1x128xf32>
    %245 = arith.addf %243, %244 : vector<1x128xf32>
    %246 = math.tanh %235 : vector<1x128xf32>
    %247 = arith.mulf %246, %245 : vector<1x128xf32>
    %c5_i32 = arith.constant 5 : i32
    %248 = arith.mulf %247, %34 : vector<1x128xf32>
    %249 = arith.index_cast %c5_i32 : i32 to index
    %c0_91 = arith.constant 0 : index
    %c0_92 = arith.constant 0 : index
    %250 = vector.load %arg7[%249, %c0_91, %c0_92] : memref<8x1x128xf32, #tpu.memory_space<vmem>>, vector<1x1x128xf32>
    %251 = vector.shape_cast %250 : vector<1x1x128xf32> to vector<1x128xf32>
    %252 = arith.addf %248, %251 : vector<1x128xf32>
    %253 = math.tanh %252 : vector<1x128xf32>
    %cst_93 = arith.constant 5.000000e-01 : f32
    %254 = vector.broadcast %cst_93 : f32 to vector<1x128xf32>
    %255 = arith.mulf %254, %253 : vector<1x128xf32>
    %cst_94 = arith.constant 5.000000e-01 : f32
    %256 = vector.broadcast %cst_94 : f32 to vector<1x128xf32>
    %257 = arith.addf %255, %256 : vector<1x128xf32>
    %258 = arith.mulf %247, %38 : vector<1x128xf32>
    %259 = arith.index_cast %c5_i32 : i32 to index
    %c0_95 = arith.constant 0 : index
    %c0_96 = arith.constant 0 : index
    %260 = vector.load %arg9[%259, %c0_95, %c0_96] : memref<8x1x128xf32, #tpu.memory_space<vmem>>, vector<1x1x128xf32>
    %261 = vector.shape_cast %260 : vector<1x1x128xf32> to vector<1x128xf32>
    %262 = arith.addf %258, %261 : vector<1x128xf32>
    %263 = math.tanh %262 : vector<1x128xf32>
    %264 = arith.mulf %247, %36 : vector<1x128xf32>
    %265 = arith.index_cast %c5_i32 : i32 to index
    %c0_97 = arith.constant 0 : index
    %c0_98 = arith.constant 0 : index
    %266 = vector.load %arg8[%265, %c0_97, %c0_98] : memref<8x1x128xf32, #tpu.memory_space<vmem>>, vector<1x1x128xf32>
    %267 = vector.shape_cast %266 : vector<1x1x128xf32> to vector<1x128xf32>
    %268 = arith.addf %264, %267 : vector<1x128xf32>
    %269 = math.tanh %268 : vector<1x128xf32>
    %cst_99 = arith.constant 5.000000e-01 : f32
    %270 = vector.broadcast %cst_99 : f32 to vector<1x128xf32>
    %271 = arith.mulf %270, %269 : vector<1x128xf32>
    %cst_100 = arith.constant 5.000000e-01 : f32
    %272 = vector.broadcast %cst_100 : f32 to vector<1x128xf32>
    %273 = arith.addf %271, %272 : vector<1x128xf32>
    %274 = arith.mulf %235, %257 : vector<1x128xf32>
    %275 = arith.mulf %263, %273 : vector<1x128xf32>
    %276 = arith.addf %274, %275 : vector<1x128xf32>
    %277 = arith.mulf %247, %40 : vector<1x128xf32>
    %278 = arith.index_cast %c5_i32 : i32 to index
    %c0_101 = arith.constant 0 : index
    %c0_102 = arith.constant 0 : index
    %279 = vector.load %arg10[%278, %c0_101, %c0_102] : memref<8x1x128xf32, #tpu.memory_space<vmem>>, vector<1x1x128xf32>
    %280 = vector.shape_cast %279 : vector<1x1x128xf32> to vector<1x128xf32>
    %281 = arith.addf %277, %280 : vector<1x128xf32>
    %282 = math.tanh %281 : vector<1x128xf32>
    %cst_103 = arith.constant 5.000000e-01 : f32
    %283 = vector.broadcast %cst_103 : f32 to vector<1x128xf32>
    %284 = arith.mulf %283, %282 : vector<1x128xf32>
    %cst_104 = arith.constant 5.000000e-01 : f32
    %285 = vector.broadcast %cst_104 : f32 to vector<1x128xf32>
    %286 = arith.addf %284, %285 : vector<1x128xf32>
    %287 = math.tanh %276 : vector<1x128xf32>
    %288 = arith.mulf %287, %286 : vector<1x128xf32>
    %c6_i32 = arith.constant 6 : i32
    %289 = arith.mulf %288, %34 : vector<1x128xf32>
    %290 = arith.index_cast %c6_i32 : i32 to index
    %c0_105 = arith.constant 0 : index
    %c0_106 = arith.constant 0 : index
    %291 = vector.load %arg7[%290, %c0_105, %c0_106] : memref<8x1x128xf32, #tpu.memory_space<vmem>>, vector<1x1x128xf32>
    %292 = vector.shape_cast %291 : vector<1x1x128xf32> to vector<1x128xf32>
    %293 = arith.addf %289, %292 : vector<1x128xf32>
    %294 = math.tanh %293 : vector<1x128xf32>
    %cst_107 = arith.constant 5.000000e-01 : f32
    %295 = vector.broadcast %cst_107 : f32 to vector<1x128xf32>
    %296 = arith.mulf %295, %294 : vector<1x128xf32>
    %cst_108 = arith.constant 5.000000e-01 : f32
    %297 = vector.broadcast %cst_108 : f32 to vector<1x128xf32>
    %298 = arith.addf %296, %297 : vector<1x128xf32>
    %299 = arith.mulf %288, %38 : vector<1x128xf32>
    %300 = arith.index_cast %c6_i32 : i32 to index
    %c0_109 = arith.constant 0 : index
    %c0_110 = arith.constant 0 : index
    %301 = vector.load %arg9[%300, %c0_109, %c0_110] : memref<8x1x128xf32, #tpu.memory_space<vmem>>, vector<1x1x128xf32>
    %302 = vector.shape_cast %301 : vector<1x1x128xf32> to vector<1x128xf32>
    %303 = arith.addf %299, %302 : vector<1x128xf32>
    %304 = math.tanh %303 : vector<1x128xf32>
    %305 = arith.mulf %288, %36 : vector<1x128xf32>
    %306 = arith.index_cast %c6_i32 : i32 to index
    %c0_111 = arith.constant 0 : index
    %c0_112 = arith.constant 0 : index
    %307 = vector.load %arg8[%306, %c0_111, %c0_112] : memref<8x1x128xf32, #tpu.memory_space<vmem>>, vector<1x1x128xf32>
    %308 = vector.shape_cast %307 : vector<1x1x128xf32> to vector<1x128xf32>
    %309 = arith.addf %305, %308 : vector<1x128xf32>
    %310 = math.tanh %309 : vector<1x128xf32>
    %cst_113 = arith.constant 5.000000e-01 : f32
    %311 = vector.broadcast %cst_113 : f32 to vector<1x128xf32>
    %312 = arith.mulf %311, %310 : vector<1x128xf32>
    %cst_114 = arith.constant 5.000000e-01 : f32
    %313 = vector.broadcast %cst_114 : f32 to vector<1x128xf32>
    %314 = arith.addf %312, %313 : vector<1x128xf32>
    %315 = arith.mulf %276, %298 : vector<1x128xf32>
    %316 = arith.mulf %304, %314 : vector<1x128xf32>
    %317 = arith.addf %315, %316 : vector<1x128xf32>
    %318 = arith.mulf %288, %40 : vector<1x128xf32>
    %319 = arith.index_cast %c6_i32 : i32 to index
    %c0_115 = arith.constant 0 : index
    %c0_116 = arith.constant 0 : index
    %320 = vector.load %arg10[%319, %c0_115, %c0_116] : memref<8x1x128xf32, #tpu.memory_space<vmem>>, vector<1x1x128xf32>
    %321 = vector.shape_cast %320 : vector<1x1x128xf32> to vector<1x128xf32>
    %322 = arith.addf %318, %321 : vector<1x128xf32>
    %323 = math.tanh %322 : vector<1x128xf32>
    %cst_117 = arith.constant 5.000000e-01 : f32
    %324 = vector.broadcast %cst_117 : f32 to vector<1x128xf32>
    %325 = arith.mulf %324, %323 : vector<1x128xf32>
    %cst_118 = arith.constant 5.000000e-01 : f32
    %326 = vector.broadcast %cst_118 : f32 to vector<1x128xf32>
    %327 = arith.addf %325, %326 : vector<1x128xf32>
    %328 = math.tanh %317 : vector<1x128xf32>
    %329 = arith.mulf %328, %327 : vector<1x128xf32>
    %c7_i32 = arith.constant 7 : i32
    %330 = arith.mulf %329, %34 : vector<1x128xf32>
    %331 = arith.index_cast %c7_i32 : i32 to index
    %c0_119 = arith.constant 0 : index
    %c0_120 = arith.constant 0 : index
    %332 = vector.load %arg7[%331, %c0_119, %c0_120] : memref<8x1x128xf32, #tpu.memory_space<vmem>>, vector<1x1x128xf32>
    %333 = vector.shape_cast %332 : vector<1x1x128xf32> to vector<1x128xf32>
    %334 = arith.addf %330, %333 : vector<1x128xf32>
    %335 = math.tanh %334 : vector<1x128xf32>
    %cst_121 = arith.constant 5.000000e-01 : f32
    %336 = vector.broadcast %cst_121 : f32 to vector<1x128xf32>
    %337 = arith.mulf %336, %335 : vector<1x128xf32>
    %cst_122 = arith.constant 5.000000e-01 : f32
    %338 = vector.broadcast %cst_122 : f32 to vector<1x128xf32>
    %339 = arith.addf %337, %338 : vector<1x128xf32>
    %340 = arith.mulf %329, %38 : vector<1x128xf32>
    %341 = arith.index_cast %c7_i32 : i32 to index
    %c0_123 = arith.constant 0 : index
    %c0_124 = arith.constant 0 : index
    %342 = vector.load %arg9[%341, %c0_123, %c0_124] : memref<8x1x128xf32, #tpu.memory_space<vmem>>, vector<1x1x128xf32>
    %343 = vector.shape_cast %342 : vector<1x1x128xf32> to vector<1x128xf32>
    %344 = arith.addf %340, %343 : vector<1x128xf32>
    %345 = math.tanh %344 : vector<1x128xf32>
    %346 = arith.mulf %329, %36 : vector<1x128xf32>
    %347 = arith.index_cast %c7_i32 : i32 to index
    %c0_125 = arith.constant 0 : index
    %c0_126 = arith.constant 0 : index
    %348 = vector.load %arg8[%347, %c0_125, %c0_126] : memref<8x1x128xf32, #tpu.memory_space<vmem>>, vector<1x1x128xf32>
    %349 = vector.shape_cast %348 : vector<1x1x128xf32> to vector<1x128xf32>
    %350 = arith.addf %346, %349 : vector<1x128xf32>
    %351 = math.tanh %350 : vector<1x128xf32>
    %cst_127 = arith.constant 5.000000e-01 : f32
    %352 = vector.broadcast %cst_127 : f32 to vector<1x128xf32>
    %353 = arith.mulf %352, %351 : vector<1x128xf32>
    %cst_128 = arith.constant 5.000000e-01 : f32
    %354 = vector.broadcast %cst_128 : f32 to vector<1x128xf32>
    %355 = arith.addf %353, %354 : vector<1x128xf32>
    %356 = arith.mulf %317, %339 : vector<1x128xf32>
    %357 = arith.mulf %345, %355 : vector<1x128xf32>
    %358 = arith.addf %356, %357 : vector<1x128xf32>
    %359 = arith.mulf %329, %40 : vector<1x128xf32>
    %360 = arith.index_cast %c7_i32 : i32 to index
    %c0_129 = arith.constant 0 : index
    %c0_130 = arith.constant 0 : index
    %361 = vector.load %arg10[%360, %c0_129, %c0_130] : memref<8x1x128xf32, #tpu.memory_space<vmem>>, vector<1x1x128xf32>
    %362 = vector.shape_cast %361 : vector<1x1x128xf32> to vector<1x128xf32>
    %363 = arith.addf %359, %362 : vector<1x128xf32>
    %364 = math.tanh %363 : vector<1x128xf32>
    %cst_131 = arith.constant 5.000000e-01 : f32
    %365 = vector.broadcast %cst_131 : f32 to vector<1x128xf32>
    %366 = arith.mulf %365, %364 : vector<1x128xf32>
    %cst_132 = arith.constant 5.000000e-01 : f32
    %367 = vector.broadcast %cst_132 : f32 to vector<1x128xf32>
    %368 = arith.addf %366, %367 : vector<1x128xf32>
    %369 = math.tanh %358 : vector<1x128xf32>
    %370 = arith.mulf %369, %368 : vector<1x128xf32>
    %c8_i32 = arith.constant 8 : i32
    %c0_133 = arith.constant 0 : index
    %c0_134 = arith.constant 0 : index
    %371 = vector.load %arg5[%c0_133, %c0_134] : memref<1x128xf32, #tpu.memory_space<vmem>>, vector<1x128xf32>
    tpu.vector_store %arg5[%c0_133, %c0_134], %358 {strides = array<i32>} : memref<1x128xf32, #tpu.memory_space<vmem>>, vector<1x128xf32>,
    %c0_135 = arith.constant 0 : index
    %c0_136 = arith.constant 0 : index
    %372 = vector.load %arg6[%c0_135, %c0_136] : memref<1x128xf32, #tpu.memory_space<vmem>>, vector<1x128xf32>
    tpu.vector_store %arg6[%c0_135, %c0_136], %370 {strides = array<i32>} : memref<1x128xf32, #tpu.memory_space<vmem>>, vector<1x128xf32>,
    %c0_i32_137 = arith.constant 0 : i32
    %373 = arith.cmpi eq, %arg1, %c0_i32_137 : i32
    %374 = arith.extui %373 : i1 to i32
    %c0_i32_138 = arith.constant 0 : i32
    %375 = arith.cmpi ne, %374, %c0_i32_138 : i32
    scf.if %375 {
      %c0_139 = arith.constant 0 : index
      %c0_140 = arith.constant 0 : index
      %376 = vector.load %arg6[%c0_139, %c0_140] : memref<1x128xf32, #tpu.memory_space<vmem>>, vector<1x128xf32>
      %c0_141 = arith.constant 0 : index
      %c0_142 = arith.constant 0 : index
      %c0_143 = arith.constant 0 : index
      %377 = vector.load %arg4[%c0_141, %c0_142, %c0_143] : memref<1x1x128xf32, #tpu.memory_space<vmem>>, vector<1x1x128xf32>
      %378 = vector.shape_cast %377 : vector<1x1x128xf32> to vector<1x128xf32>
      %379 = vector.shape_cast %376 : vector<1x128xf32> to vector<1x1x128xf32>
      tpu.vector_store %arg4[%c0_141, %c0_142, %c0_143], %379 {strides = array<i32>} : memref<1x1x128xf32, #tpu.memory_space<vmem>>, vector<1x1x128xf32>,
    } else {
    }
    return
  }
  func.func @transform_0(%arg0: i32, %arg1: i32, %arg2: memref<12xf32, #tpu.memory_space<smem>>) -> (i32, i32, i32, i32) {
    %c0_i32 = arith.constant 0 : i32
    %c0_i32_0 = arith.constant 0 : i32
    %c0_i32_1 = arith.constant 0 : i32
    return %arg0, %arg1, %c0_i32, %c0_i32_0 : i32, i32, i32, i32
  }
  func.func @transform_1(%arg0: i32, %arg1: i32, %arg2: memref<12xf32, #tpu.memory_space<smem>>) -> (i32, i32, i32) {
    %c0_i32 = arith.constant 0 : i32
    %c0_i32_0 = arith.constant 0 : i32
    %c0_i32_1 = arith.constant 0 : i32
    return %arg0, %c0_i32, %c0_i32_0 : i32, i32, i32
  }
}

</mosaic_0001>

<bundles_post_ra>
// kernel: tpu_custom_call.1
= control target key start
LH: loop header
LB: loop body
LE: loop exit
PB: predicated region body
PF: predicated region fallthrough
CT: control target
= control target key end

     0   :  { %s773_s0 = inlined_call_operand.hbm [shape: f32[12], index: 0, kind: input, shape index: {}]   ;;  %s774_s1 = inlined_call_operand.hbm [shape: f32[1,8,1,128], index: 1, kind: input, shape index: {}]   ;;  %s775_s2 = inlined_call_operand.hbm [shape: f32[1,1,128], index: 2, kind: output, shape index: {}]  }
   0x1   :  { %s527_s11 = scalar_lea.hbm %s773_s0, 16 }
   0x2   :  { %p528_p0 = scmp.ne.s32.totalorder %s773_s0, %s527_s11  ;;  %p531_p1 = scmp.lt.u32.totalorder %s527_s11, %s773_s0 }
   0x4   :  { %p533_p2 = pnand %p531_p1, %p528_p0 }
   0x6   :  { %536 = shalt.err (!%p533_p2)  }
   0x7   :  { %s587_s16 = smov [#allocation9]  }
   0x8   :  { %8 = dma.hbm_to_smem %s773_s0, 16, %s587_s16, [#allocation8] }
   0x9   :  { %581 = dma.done.wait [#allocation8], 16 }
   0xa   :  { %582 = vsyncadd [#allocation8], 4294967280 }
   0xb   :  { %10 = sfence }
   0xc   :  { %11 = vsyncpa [#allocation11], 0 }
   0xd   :  { %12 = vsyncpa [#allocation12], 0  ;;  %s588_s19 = smov [#allocation10]   ;;  %s537_s23 = scalar_lea.hbm %s774_s1, 128 }
   0xe   :  { %s18_s20 = sshll.u32 %s588_s19, 4  ;;  %p538_p3 = scmp.ne.s32.totalorder %s774_s1, %s537_s23  ;;  %s19_s20 = int_to_ptr.vmem [resolvable:$true] %s18_s20 }
   0xf   :  { %p541_p4 = scmp.lt.u32.totalorder %s537_s23, %s774_s1 }
  0x11   :  { %p543_p5 = pnand %p541_p4, %p538_p3 }
  0x13   :  { %546 = shalt.err (!%p543_p5)
}
  0x14   :  { %s547_s0 = scalar_lea.vmem %s19_s20, 128  ;;  %p552_p7 = scmp.lt.s32.totalorder %s19_s20, %s19_s20 }
  0x15   :  { %p548_p6 = scmp.ne.s32.totalorder %s19_s20, %s547_s0  ;;  %p553_p8 = scmp.lt.s32.totalorder %s547_s0, %s547_s0 }
  0x17   :  { %p554_p9 = por %p553_p8, %p552_p7 }
  0x19   :  { %p555_p10 = pnand %p554_p9, %p548_p6 }
  0x1b   :  { %558 = shalt.err (!%p555_p10)
}
  0x1c   :  { %s589_s28 = smov 16   ;;  %s590_s29 = smov 1  }
  0x1d   :  { %24 = dma.hbm_to_vmem [thread:$0]  %s774_s1, 128, %s19_s20, [#allocation11], %s589_s28, %s589_s28, %s590_s29  }
  0x1e   :  { %583 = dma.done.wait [#allocation11], 128  }
  0x1f   :  { %584 = vsyncadd [#allocation11], 4294967168  ;;  %v591_v0 = vmov 0.0   ;;  %s430_s4 = sld [smem:[#allocation9 + $0x1]]  ;;  %s431_s5 = sld [smem:[#allocation9 + $0x2]] }
  0x20   :  { %33 = vst [vmem:[#allocation3] sm:$0x1] %v591_v0  ;;  %32 = vst [vmem:[#allocation2] sm:$0x1] %v591_v0  ;;  %s432_s6 = sld [smem:[#allocation9 + $0x4]]  ;;  %s433_s7 = sld [smem:[#allocation9 + $0x5]] }
  0x21   :  { %s434_s8 = sld [smem:[#allocation9 + $0x7]]  ;;  %s435_s9 = sld [smem:[#allocation9 + $0x8]]  ;;  %v34_v1 = vld [vmem:[#allocation10] sm:$0x1]  ;;  %v35_v4 = vld [vmem:[#allocation10 + $0x1] sm:$0x1] }
  0x22   :  { %s436_s10 = sld [smem:[#allocation9 + $0xa]]  ;;  %s437_s11 = sld [smem:[#allocation9 + $0xb]]  ;;  %v36_v13 = vld [vmem:[#allocation10 + $0x2] sm:$0x1]  ;;  %v37_v22 = vld [vmem:[#allocation10 + $0x3] sm:$0x1] }
  0x23   :  { %v38_v31 = vld [vmem:[#allocation10 + $0x4] sm:$0x1]  ;;  %v39_v40 = vld [vmem:[#allocation10 + $0x5] sm:$0x1]  ;;  %s678_s1 = sld [smem:[#allocation9]]  ;;  %s684_s12 = sld [smem:[#allocation9 + $0x3]] }
  0x24   :  { %v40_v49 = vld [vmem:[#allocation10 + $0x6] sm:$0x1]  ;;  %s686_s13 = sld [smem:[#allocation9 + $0x6]]  ;;  %v41_v58 = vld [vmem:[#allocation10 + $0x7] sm:$0x1]  ;;  %s440_s14 = sld [smem:[#allocation9 + $0x9]] }
  0x25   :  { %v632_v2 = vstv %s430_s4  ;;  %v634_v3 = vstv %s431_s5  ;;  %s592_s15 = smov [#allocation13]  }
  0x26   :  { %v44_v5 = vmul.f32 %v632_v2, %v34_v1  ;;  %v637_v6 = vstv %s432_s6  ;;  %v639_v7 = vstv %s433_s7  ;;  %v45_v8 = vmul.f32 %v632_v2, %v35_v4  ;;  %s421_s16 = sshll.u32 %s592_s15, 4  ;;  %s422_s16 = int_to_ptr.vmem [resolvable:$true] %s421_s16 }
  0x27   :  { %v72_v9 = vmul.f32 %v637_v6, %v34_v1  ;;  %v643_v10 = vstv %s434_s8  ;;  %v645_v11 = vstv %s435_s9  ;;  %v73_v12 = vmul.f32 %v637_v6, %v35_v4  ;;  %s559_s17 = scalar_lea.vmem %s422_s16, 16  ;;  %s563_s18 = scalar_lea.vmem %s422_s16, 32 }
  0x28   :  { %v54_v14 = vadd.f32 %v634_v3, %v44_v5  ;;  %v100_v15 = vmul.f32 %v643_v10, %v34_v1  ;;  %v650_v16 = vstv %s436_s10  ;;  %v652_v17 = vstv %s437_s11  ;;  %p560_p11 = scmp.ne.s32.totalorder %s422_s16, %s559_s17  ;;  %p564_p12 = scmp.lt.s32.totalorder %s422_s16, %s422_s16 }
  0x29   :  { %v82_v18 = vadd.f32 %v639_v7, %v72_v9  ;;  %v128_v19 = vmul.f32 %v650_v16, %v34_v1  ;;  %v55_v20 = vadd.f32 %v634_v3, %v45_v8  ;;  %v83_v21 = vadd.f32 %v639_v7, %v73_v12  ;;  %p565_p13 = scmp.lt.s32.totalorder %s563_s18, %s559_s17 }
  0x2a   :  { %62 = vst [vmem:[#allocation4] sm:$0x1] %v54_v14  ;;  %v110_v23 = vadd.f32 %v645_v11, %v100_v15  ;;  %v101_v24 = vmul.f32 %v643_v10, %v35_v4  ;;  %v129_v25 = vmul.f32 %v650_v16, %v35_v4  ;;  %v46_v26 = vmul.f32 %v632_v2, %v36_v13 }
  0x2b   :  { %90 = vst [vmem:[#allocation5] sm:$0x1] %v82_v18  ;;  %v138_v27 = vadd.f32 %v652_v17, %v128_v19  ;;  %63 = vst [vmem:[#allocation4 + $0x1] sm:$0x1] %v55_v20  ;;  %v74_v28 = vmul.f32 %v637_v6, %v36_v13  ;;  %v102_v29 = vmul.f32 %v643_v10, %v36_v13  ;;  %v163_v19 = vld [vmem:[#allocation3] sm:$0x1]  ;;  %p566_p0 = por %p565_p13, %p564_p12 }
  0x2c   :  { %91 = vst [vmem:[#allocation5 + $0x1] sm:$0x1] %v83_v21  ;;  %v130_v30 = vmul.f32 %v650_v16, %v36_v13  ;;  %118 = vst [vmem:[#allocation6] sm:$0x1] %v110_v23  ;;  %v111_v32 = vadd.f32 %v645_v11, %v101_v24  ;;  %v139_v33 = vadd.f32 %v652_v17, %v129_v25  ;;  %v720_v24 = vstv %s684_s12 }
  0x2d   :  { %v56_v34 = vadd.f32 %v634_v3, %v46_v26  ;;  %v47_v35 = vmul.f32 %v632_v2, %v37_v22  ;;  %146 = vst [vmem:[#allocation7] sm:$0x1] %v138_v27  ;;  %v84_v36 = vadd.f32 %v639_v7, %v74_v28  ;;  %v112_v37 = vadd.f32 %v645_v11, %v102_v29  ;;  %p567_p1 = pnand %p566_p0, %p560_p11 }
  0x2e   :  { %v140_v38 = vadd.f32 %v652_v17, %v130_v30  ;;  %v75_v39 = vmul.f32 %v637_v6, %v37_v22  ;;  %119 = vst [vmem:[#allocation6 + $0x1] sm:$0x1] %v111_v32  ;;  %147 = vst [vmem:[#allocation7 + $0x1] sm:$0x1] %v139_v33  ;;  %v103_v42 = vmul.f32 %v643_v10, %v37_v22 }
  0x2f   :  { %64 = vst [vmem:[#allocation4 + $0x2] sm:$0x1] %v56_v34  ;;  %v57_v41 = vadd.f32 %v634_v3, %v47_v35  ;;  %v131_v43 = vmul.f32 %v650_v16, %v37_v22  ;;  %v48_v44 = vmul.f32 %v632_v2, %v38_v31  ;;  %92 = vst [vmem:[#allocation5 + $0x2] sm:$0x1] %v84_v36  ;;  %v716_v22 = vstv %s678_s1 }
  0x30   :  { %120 = vst [vmem:[#allocation6 + $0x2] sm:$0x1] %v112_v37  ;;  %148 = vst [vmem:[#allocation7 + $0x2] sm:$0x1] %v140_v38  ;;  %v85_v45 = vadd.f32 %v639_v7, %v75_v39  ;;  %v76_v46 = vmul.f32 %v637_v6, %v38_v31  ;;  %v104_v47 = vmul.f32 %v643_v10, %v38_v31  ;;  %v162_v37 = vld [vmem:[#allocation2] sm:$0x1] }
  0x31   :  { %v132_v48 = vmul.f32 %v650_v16, %v38_v31  ;;  %65 = vst [vmem:[#allocation4 + $0x3] sm:$0x1] %v57_v41  ;;  %v113_v50 = vadd.f32 %v645_v11, %v103_v42  ;;  %v141_v51 = vadd.f32 %v652_v17, %v131_v43  ;;  %v58_v52 = vadd.f32 %v634_v3, %v48_v44  ;;  %v165_v25 = vld [vmem:[#allocation4] sm:$0x1] }
  0x32   :  { %v49_v53 = vmul.f32 %v632_v2, %v39_v40  ;;  %93 = vst [vmem:[#allocation5 + $0x3] sm:$0x1] %v85_v45  ;;  %v86_v54 = vadd.f32 %v639_v7, %v76_v46  ;;  %v114_v55 = vadd.f32 %v645_v11, %v104_v47  ;;  %v77_v57 = vmul.f32 %v637_v6, %v39_v40  ;;  %v175_v26 = vld [vmem:[#allocation5] sm:$0x1] }
  0x33   :  { %v142_v56 = vadd.f32 %v652_v17, %v132_v48  ;;  %121 = vst [vmem:[#allocation6 + $0x3] sm:$0x1] %v113_v50  ;;  %149 = vst [vmem:[#allocation7 + $0x3] sm:$0x1] %v141_v51  ;;  %v105_v60 = vmul.f32 %v643_v10, %v39_v40  ;;  %v133_v61 = vmul.f32 %v650_v16, %v39_v40  ;;  %v171_v29 = vld [vmem:[#allocation6] sm:$0x1]  ;;  %v730_v31 = vstv %s440_s14 }
  0x34   :  { %66 = vst [vmem:[#allocation4 + $0x4] sm:$0x1] %v58_v52  ;;  %v59_v59 = vadd.f32 %v634_v3, %v49_v53  ;;  %v50_v62 = vmul.f32 %v632_v2, %v40_v49  ;;  %94 = vst [vmem:[#allocation5 + $0x4] sm:$0x1] %v86_v54  ;;  %v87_v63 = vadd.f32 %v639_v7, %v77_v57  ;;  %v193_v50 = vld [vmem:[#allocation4 + $0x1] sm:$0x1] }
  0x35   :  { %122 = vst [vmem:[#allocation6 + $0x4] sm:$0x1] %v114_v55  ;;  %150 = vst [vmem:[#allocation7 + $0x4] sm:$0x1] %v142_v56  ;;  %v78_v0 = vmul.f32 %v637_v6, %v40_v49  ;;  %v106_v1 = vmul.f32 %v643_v10, %v40_v49  ;;  %v134_v4 = vmul.f32 %v650_v16, %v40_v49  ;;  %v205_v51 = vld [vmem:[#allocation5 + $0x1] sm:$0x1] }
  0x36   :  { %67 = vst [vmem:[#allocation4 + $0x5] sm:$0x1] %v59_v59  ;;  %v115_v5 = vadd.f32 %v645_v11, %v105_v60  ;;  %v143_v8 = vadd.f32 %v652_v17, %v133_v61  ;;  %v60_v9 = vadd.f32 %v634_v3, %v50_v62  ;;  %v51_v12 = vmul.f32 %v632_v2, %v41_v58  ;;  %v200_v57 = vld [vmem:[#allocation6 + $0x1] sm:$0x1]  ;;  %v215_v60 = vld [vmem:[#allocation7 + $0x1] sm:$0x1] }
  0x37   :  { %95 = vst [vmem:[#allocation5 + $0x5] sm:$0x1] %v87_v63  ;;  %v88_v13 = vadd.f32 %v639_v7, %v78_v0  ;;  %v116_v14 = vadd.f32 %v645_v11, %v106_v1  ;;  %v144_v15 = vadd.f32 %v652_v17, %v134_v4  ;;  %v79_v18 = vmul.f32 %v637_v6, %v41_v58 }
  0x38   :  { %123 = vst [vmem:[#allocation6 + $0x5] sm:$0x1] %v115_v5  ;;  %151 = vst [vmem:[#allocation7 + $0x5] sm:$0x1] %v143_v8  ;;  %v61_v20 = vadd.f32 %v634_v3, %v51_v12  ;;  %v107_v21 = vmul.f32 %v643_v10, %v41_v58  ;;  %v135_v2 = vmul.f32 %v650_v16, %v41_v58  ;;  %v723_v6 = vstv %s686_s13 }
  0x39   :  { %68 = vst [vmem:[#allocation4 + $0x6] sm:$0x1] %v60_v9  ;;  %96 = vst [vmem:[#allocation5 + $0x6] sm:$0x1] %v88_v13  ;;  %v89_v23 = vadd.f32 %v639_v7, %v79_v18  ;;  %v164_v16 = vmul.f32 %v163_v19, %v716_v22  ;;  %v174_v27 = vmul.f32 %v163_v19, %v720_v24 }
  0x3a   :  { %124 = vst [vmem:[#allocation6 + $0x6] sm:$0x1] %v116_v14  ;;  %152 = vst [vmem:[#allocation7 + $0x6] sm:$0x1] %v144_v15  ;;  %v117_v3 = vadd.f32 %v645_v11, %v107_v21  ;;  %v145_v10 = vadd.f32 %v652_v17, %v135_v2  ;;  %v170_v7 = vmul.f32 %v163_v19, %v723_v6  ;;  %v184_v17 = vld [vmem:[#allocation7] sm:$0x1] }
  0x3b   :  { %69 = vst [vmem:[#allocation4 + $0x7] sm:$0x1] %v61_v20  ;;  %97 = vst [vmem:[#allocation5 + $0x7] sm:$0x1] %v89_v23  ;;  %v166_v28 = vadd.f32 %v165_v25, %v164_v16  ;;  %v176_v30 = vadd.f32 %v175_v26, %v174_v27  ;;  %v183_v11 = vmul.f32 %v163_v19, %v730_v31  ;;  %v224_v21 = vld [vmem:[#allocation4 + $0x2] sm:$0x1] }
  0x3c   :  { %125 = vst [vmem:[#allocation6 + $0x7] sm:$0x1] %v117_v3  ;;  %153 = vst [vmem:[#allocation7 + $0x7] sm:$0x1] %v145_v10  ;;  %v172_v32 = vadd.f32 %v171_v29, %v170_v7  ;;  %v236_v2 = vld [vmem:[#allocation5 + $0x2] sm:$0x1] }
  0x3d   :  { %447 = vtanh.f32 %v166_v28  ;;  %v185_v33 = vadd.f32 %v184_v17, %v183_v11  ;;  %v231_v26 = vld [vmem:[#allocation6 + $0x2] sm:$0x1]  ;;  %v246_v7 = vld [vmem:[#allocation7 + $0x2] sm:$0x1] }
  0x3e   :  { %449 = vtanh.f32 %v176_v30 }
  0x3f   :  { %451 = vtanh.f32 %v172_v32 }
  0x40   :  { %453 = vtanh.f32 %v185_v33 }
  0x47   :  { %v448_v34 = vpop.eup %447 }
  0x48   :  { %v168_v35 = vmul.f32 0.5, %v448_v34  ;;  %v450_v36 = vpop.eup %449 }
  0x49   :  { %v178_v39 = vmul.f32 0.5, %v450_v36  ;;  %v452_v42 = vpop.eup %451 }
  0x4a   :  { %v169_v38 = vadd.f32 0.5, %v168_v35  ;;  %v454_v45 = vpop.eup %453 }
  0x4b   :  { %v179_v40 = vadd.f32 0.5, %v178_v39  ;;  %v187_v46 = vmul.f32 0.5, %v454_v45  ;;  %v267_v45 = vld [vmem:[#allocation5 + $0x3] sm:$0x1] }
  0x4c   :  { %v180_v41 = vmul.f32 %v169_v38, %v162_v37 }
  0x4d   :  { %v181_v43 = vmul.f32 %v452_v42, %v179_v40  ;;  %v188_v47 = vadd.f32 0.5, %v187_v46 }
  0x4f   :  { %v182_v44 = vadd.f32 %v181_v43, %v180_v41 }
  0x51   :  { %455 = vtanh.f32 %v182_v44 }
  0x5b   :  { %v456_v48 = vpop.eup %455 }
  0x5c   :  { %v190_v49 = vmul.f32 %v456_v48, %v188_v47 }
  0x5e   :  { %v191_v52 = vmul.f32 %v190_v49, %v716_v22  ;;  %v203_v53 = vmul.f32 %v190_v49, %v720_v24  ;;  %v198_v55 = vmul.f32 %v190_v49, %v723_v6  ;;  %v213_v59 = vmul.f32 %v190_v49, %v730_v31 }
  0x60   :  { %v194_v54 = vadd.f32 %v193_v50, %v191_v52  ;;  %v206_v56 = vadd.f32 %v205_v51, %v203_v53  ;;  %v201_v58 = vadd.f32 %v200_v57, %v198_v55  ;;  %v216_v61 = vadd.f32 %v215_v60, %v213_v59  ;;  %v262_v51 = vld [vmem:[#allocation6 + $0x3] sm:$0x1] }
  0x62   :  { %457 = vtanh.f32 %v194_v54  ;;  %v277_v54 = vld [vmem:[#allocation7 + $0x3] sm:$0x1] }
  0x63   :  { %459 = vtanh.f32 %v206_v56 }
  0x64   :  { %461 = vtanh.f32 %v201_v58 }
  0x65   :  { %463 = vtanh.f32 %v216_v61 }
  0x6c   :  { %v458_v62 = vpop.eup %457 }
  0x6d   :  { %v196_v63 = vmul.f32 0.5, %v458_v62  ;;  %v460_v0 = vpop.eup %459 }
  0x6e   :  { %v208_v4 = vmul.f32 0.5, %v460_v0  ;;  %v462_v9 = vpop.eup %461 }
  0x6f   :  { %v197_v1 = vadd.f32 0.5, %v196_v63  ;;  %v464_v14 = vpop.eup %463 }
  0x70   :  { %v209_v5 = vadd.f32 0.5, %v208_v4  ;;  %v218_v15 = vmul.f32 0.5, %v464_v14  ;;  %v298_v14 = vld [vmem:[#allocation5 + $0x4] sm:$0x1] }
  0x71   :  { %v210_v8 = vmul.f32 %v197_v1, %v182_v44  ;;  %v255_v44 = vld [vmem:[#allocation4 + $0x3] sm:$0x1] }
  0x72   :  { %v211_v12 = vmul.f32 %v462_v9, %v209_v5  ;;  %v219_v18 = vadd.f32 0.5, %v218_v15 }
  0x74   :  { %v212_v13 = vadd.f32 %v211_v12, %v210_v8 }
  0x76   :  { %465 = vtanh.f32 %v212_v13 }
  0x80   :  { %v466_v19 = vpop.eup %465 }
  0x81   :  { %v221_v20 = vmul.f32 %v466_v19, %v219_v18 }
  0x83   :  { %v222_v23 = vmul.f32 %v221_v20, %v716_v22  ;;  %v234_v25 = vmul.f32 %v221_v20, %v720_v24  ;;  %v229_v10 = vmul.f32 %v221_v20, %v723_v6  ;;  %v244_v28 = vmul.f32 %v221_v20, %v730_v31 }
  0x85   :  { %v225_v3 = vadd.f32 %v224_v21, %v222_v23  ;;  %v237_v16 = vadd.f32 %v236_v2, %v234_v25  ;;  %v232_v27 = vadd.f32 %v231_v26, %v229_v10  ;;  %v247_v29 = vadd.f32 %v246_v7, %v244_v28  ;;  %v293_v2 = vld [vmem:[#allocation6 + $0x4] sm:$0x1] }
  0x87   :  { %467 = vtanh.f32 %v225_v3  ;;  %v308_v3 = vld [vmem:[#allocation7 + $0x4] sm:$0x1] }
  0x88   :  { %469 = vtanh.f32 %v237_v16 }
  0x89   :  { %471 = vtanh.f32 %v232_v27 }
  0x8a   :  { %473 = vtanh.f32 %v247_v29 }
  0x91   :  { %v468_v30 = vpop.eup %467 }
  0x92   :  { %v227_v32 = vmul.f32 0.5, %v468_v30  ;;  %v470_v11 = vpop.eup %469 }
  0x93   :  { %v239_v33 = vmul.f32 0.5, %v470_v11  ;;  %v472_v36 = vpop.eup %471 }
  0x94   :  { %v228_v17 = vadd.f32 0.5, %v227_v32  ;;  %v474_v39 = vpop.eup %473 }
  0x95   :  { %v240_v34 = vadd.f32 0.5, %v239_v33  ;;  %v249_v40 = vmul.f32 0.5, %v474_v39  ;;  %v329_v39 = vld [vmem:[#allocation5 + $0x5] sm:$0x1] }
  0x96   :  { %v241_v35 = vmul.f32 %v228_v17, %v212_v13  ;;  %v286_v13 = vld [vmem:[#allocation4 + $0x4] sm:$0x1] }
  0x97   :  { %v242_v37 = vmul.f32 %v472_v36, %v240_v34  ;;  %v250_v41 = vadd.f32 0.5, %v249_v40 }
  0x99   :  { %v243_v38 = vadd.f32 %v242_v37, %v241_v35 }
  0x9b   :  { %475 = vtanh.f32 %v243_v38 }
  0xa5   :  { %v476_v42 = vpop.eup %475 }
  0xa6   :  { %v252_v43 = vmul.f32 %v476_v42, %v250_v41 }
  0xa8   :  { %v253_v46 = vmul.f32 %v252_v43, %v716_v22  ;;  %v265_v47 = vmul.f32 %v252_v43, %v720_v24  ;;  %v260_v49 = vmul.f32 %v252_v43, %v723_v6  ;;  %v275_v53 = vmul.f32 %v252_v43, %v730_v31 }
  0xaa   :  { %v256_v48 = vadd.f32 %v255_v44, %v253_v46  ;;  %v268_v50 = vadd.f32 %v267_v45, %v265_v47  ;;  %v263_v52 = vadd.f32 %v262_v51, %v260_v49  ;;  %v278_v55 = vadd.f32 %v277_v54, %v275_v53  ;;  %v324_v45 = vld [vmem:[#allocation6 + $0x5] sm:$0x1] }
  0xac   :  { %477 = vtanh.f32 %v256_v48  ;;  %v339_v48 = vld [vmem:[#allocation7 + $0x5] sm:$0x1] }
  0xad   :  { %479 = vtanh.f32 %v268_v50 }
  0xae   :  { %481 = vtanh.f32 %v263_v52 }
  0xaf   :  { %483 = vtanh.f32 %v278_v55 }
  0xb6   :  { %v478_v56 = vpop.eup %477 }
  0xb7   :  { %v258_v57 = vmul.f32 0.5, %v478_v56  ;;  %v480_v58 = vpop.eup %479 }
  0xb8   :  { %v270_v60 = vmul.f32 0.5, %v480_v58  ;;  %v482_v63 = vpop.eup %481 }
  0xb9   :  { %v259_v59 = vadd.f32 0.5, %v258_v57  ;;  %v484_v4 = vpop.eup %483 }
  0xba   :  { %v271_v61 = vadd.f32 0.5, %v270_v60  ;;  %v280_v5 = vmul.f32 0.5, %v484_v4  ;;  %v360_v4 = vld [vmem:[#allocation5 + $0x6] sm:$0x1] }
  0xbb   :  { %v272_v62 = vmul.f32 %v259_v59, %v243_v38  ;;  %v317_v38 = vld [vmem:[#allocation4 + $0x5] sm:$0x1] }
  0xbc   :  { %v273_v0 = vmul.f32 %v482_v63, %v271_v61  ;;  %v281_v8 = vadd.f32 0.5, %v280_v5 }
  0xbe   :  { %v274_v1 = vadd.f32 %v273_v0, %v272_v62 }
  0xc0   :  { %485 = vtanh.f32 %v274_v1 }
  0xca   :  { %v486_v9 = vpop.eup %485 }
  0xcb   :  { %v283_v12 = vmul.f32 %v486_v9, %v281_v8 }
  0xcd   :  { %v284_v15 = vmul.f32 %v283_v12, %v716_v22  ;;  %v296_v18 = vmul.f32 %v283_v12, %v720_v24  ;;  %v291_v20 = vmul.f32 %v283_v12, %v723_v6  ;;  %v306_v25 = vmul.f32 %v283_v12, %v730_v31 }
  0xcf   :  { %v287_v19 = vadd.f32 %v286_v13, %v284_v15  ;;  %v299_v21 = vadd.f32 %v298_v14, %v296_v18  ;;  %v294_v23 = vadd.f32 %v293_v2, %v291_v20  ;;  %v309_v10 = vadd.f32 %v308_v3, %v306_v25  ;;  %v355_v14 = vld [vmem:[#allocation6 + $0x6] sm:$0x1] }
  0xd1   :  { %487 = vtanh.f32 %v287_v19  ;;  %v370_v19 = vld [vmem:[#allocation7 + $0x6] sm:$0x1] }
  0xd2   :  { %489 = vtanh.f32 %v299_v21 }
  0xd3   :  { %491 = vtanh.f32 %v294_v23 }
  0xd4   :  { %493 = vtanh.f32 %v309_v10 }
  0xdb   :  { %v488_v16 = vpop.eup %487 }
  0xdc   :  { %v289_v26 = vmul.f32 0.5, %v488_v16  ;;  %v490_v27 = vpop.eup %489 }
  0xdd   :  { %v301_v7 = vmul.f32 0.5, %v490_v27  ;;  %v492_v32 = vpop.eup %491 }
  0xde   :  { %v290_v28 = vadd.f32 0.5, %v289_v26  ;;  %v494_v33 = vpop.eup %493 }
  0xdf   :  { %v302_v29 = vadd.f32 0.5, %v301_v7  ;;  %v311_v34 = vmul.f32 0.5, %v494_v33  ;;  %v391_v33 = vld [vmem:[#allocation5 + $0x7] sm:$0x1] }
  0xe0   :  { %v303_v30 = vmul.f32 %v290_v28, %v274_v1  ;;  %v348_v1 = vld [vmem:[#allocation4 + $0x6] sm:$0x1] }
  0xe1   :  { %v304_v11 = vmul.f32 %v492_v32, %v302_v29  ;;  %v312_v35 = vadd.f32 0.5, %v311_v34 }
  0xe3   :  { %v305_v17 = vadd.f32 %v304_v11, %v303_v30 }
  0xe5   :  { %495 = vtanh.f32 %v305_v17 }
  0xef   :  { %v496_v36 = vpop.eup %495 }
  0xf0   :  { %v314_v37 = vmul.f32 %v496_v36, %v312_v35 }
  0xf2   :  { %v315_v40 = vmul.f32 %v314_v37, %v716_v22  ;;  %v327_v41 = vmul.f32 %v314_v37, %v720_v24  ;;  %v322_v43 = vmul.f32 %v314_v37, %v723_v6  ;;  %v337_v47 = vmul.f32 %v314_v37, %v730_v31 }
  0xf4   :  { %v318_v42 = vadd.f32 %v317_v38, %v315_v40  ;;  %v330_v44 = vadd.f32 %v329_v39, %v327_v41  ;;  %v325_v46 = vadd.f32 %v324_v45, %v322_v43  ;;  %v340_v49 = vadd.f32 %v339_v48, %v337_v47  ;;  %v386_v39 = vld [vmem:[#allocation6 + $0x7] sm:$0x1] }
  0xf6   :  { %497 = vtanh.f32 %v318_v42  ;;  %v401_v42 = vld [vmem:[#allocation7 + $0x7] sm:$0x1] }
  0xf7   :  { %499 = vtanh.f32 %v330_v44 }
  0xf8   :  { %501 = vtanh.f32 %v325_v46 }
  0xf9   :  { %503 = vtanh.f32 %v340_v49 }
 0x100   :  { %v498_v50 = vpop.eup %497 }
 0x101   :  { %v320_v51 = vmul.f32 0.5, %v498_v50  ;;  %v500_v52 = vpop.eup %499 }
 0x102   :  { %v332_v54 = vmul.f32 0.5, %v500_v52  ;;  %v502_v57 = vpop.eup %501 }
 0x103   :  { %v321_v53 = vadd.f32 0.5, %v320_v51  ;;  %v504_v60 = vpop.eup %503 }
 0x104   :  { %v333_v55 = vadd.f32 0.5, %v332_v54  ;;  %v342_v61 = vmul.f32 0.5, %v504_v60 }
 0x105   :  { %v334_v56 = vmul.f32 %v321_v53, %v305_v17  ;;  %v379_v17 = vld [vmem:[#allocation4 + $0x7] sm:$0x1] }
 0x106   :  { %v335_v58 = vmul.f32 %v502_v57, %v333_v55  ;;  %v343_v62 = vadd.f32 0.5, %v342_v61 }
 0x108   :  { %v336_v59 = vadd.f32 %v335_v58, %v334_v56 }
 0x10a   :  { %505 = vtanh.f32 %v336_v59 }
 0x114   :  { %v506_v63 = vpop.eup %505 }
 0x115   :  { %v345_v0 = vmul.f32 %v506_v63, %v343_v62 }
 0x117   :  { %v346_v5 = vmul.f32 %v345_v0, %v716_v22  ;;  %v358_v8 = vmul.f32 %v345_v0, %v720_v24  ;;  %v353_v12 = vmul.f32 %v345_v0, %v723_v6  ;;  %v368_v18 = vmul.f32 %v345_v0, %v730_v31 }
 0x119   :  { %v349_v9 = vadd.f32 %v348_v1, %v346_v5  ;;  %v361_v13 = vadd.f32 %v360_v4, %v358_v8  ;;  %v356_v15 = vadd.f32 %v355_v14, %v353_v12  ;;  %v371_v20 = vadd.f32 %v370_v19, %v368_v18 }
 0x11b   :  { %507 = vtanh.f32 %v349_v9 }
 0x11c   :  { %509 = vtanh.f32 %v361_v13 }
 0x11d   :  { %511 = vtanh.f32 %v356_v15 }
 0x11e   :  { %513 = vtanh.f32 %v371_v20 }
 0x125   :  { %v508_v21 = vpop.eup %507 }
 0x126   :  { %v351_v2 = vmul.f32 0.5, %v508_v21  ;;  %v510_v23 = vpop.eup %509 }
 0x127   :  { %v363_v3 = vmul.f32 0.5, %v510_v23  ;;  %v512_v26 = vpop.eup %511 }
 0x128   :  { %v352_v25 = vadd.f32 0.5, %v351_v2  ;;  %v514_v7 = vpop.eup %513 }
 0x129   :  { %v364_v10 = vadd.f32 0.5, %v363_v3  ;;  %v373_v29 = vmul.f32 0.5, %v514_v7 }
 0x12a   :  { %v365_v16 = vmul.f32 %v352_v25, %v336_v59 }
 0x12b   :  { %v366_v27 = vmul.f32 %v512_v26, %v364_v10  ;;  %v374_v30 = vadd.f32 0.5, %v373_v29 }
 0x12d   :  { %v367_v28 = vadd.f32 %v366_v27, %v365_v16 }
 0x12f   :  { %515 = vtanh.f32 %v367_v28 }
 0x139   :  { %v516_v32 = vpop.eup %515 }
 0x13a   :  { %v376_v11 = vmul.f32 %v516_v32, %v374_v30 }
 0x13c   :  { %v377_v34 = vmul.f32 %v376_v11, %v716_v22  ;;  %v389_v35 = vmul.f32 %v376_v11, %v720_v24  ;;  %v384_v37 = vmul.f32 %v376_v11, %v723_v6  ;;  %v399_v41 = vmul.f32 %v376_v11, %v730_v31 }
 0x13e   :  { %v380_v36 = vadd.f32 %v379_v17, %v377_v34  ;;  %v392_v38 = vadd.f32 %v391_v33, %v389_v35  ;;  %v387_v40 = vadd.f32 %v386_v39, %v384_v37  ;;  %v402_v43 = vadd.f32 %v401_v42, %v399_v41 }
 0x140   :  { %517 = vtanh.f32 %v380_v36 }
 0x141   :  { %519 = vtanh.f32 %v392_v38 }
 0x142   :  { %521 = vtanh.f32 %v387_v40 }
 0x143   :  { %523 = vtanh.f32 %v402_v43 }
 0x14a   :  { %v518_v44 = vpop.eup %517 }
 0x14b   :  { %v382_v45 = vmul.f32 0.5, %v518_v44  ;;  %v520_v46 = vpop.eup %519 }
 0x14c   :  { %v394_v22 = vmul.f32 0.5, %v520_v46  ;;  %v522_v49 = vpop.eup %521 }
 0x14d   :  { %v383_v47 = vadd.f32 0.5, %v382_v45  ;;  %v524_v51 = vpop.eup %523 }
 0x14e   :  { %v395_v24 = vadd.f32 0.5, %v394_v22  ;;  %v404_v52 = vmul.f32 0.5, %v524_v51 }
 0x14f   :  { %v396_v48 = vmul.f32 %v383_v47, %v367_v28 }
 0x150   :  { %v397_v6 = vmul.f32 %v522_v49, %v395_v24  ;;  %v405_v53 = vadd.f32 0.5, %v404_v52 }
 0x152   :  { %v398_v50 = vadd.f32 %v397_v6, %v396_v48 }
 0x154   :  { %525 = vtanh.f32 %v398_v50  ;;  %408 = vst [vmem:[#allocation2] sm:$0x1] %v398_v50 }
 0x15e   :  { %v526_v31 = vpop.eup %525 }
 0x15f   :  { %v407_v54 = vmul.f32 %v526_v31, %v405_v53 }
 0x161   :  { %409 = vst [vmem:[#allocation3] sm:$0x1] %v407_v54 }
 0x168   :  { %v413_v55 = vld [vmem:[#allocation3] sm:$0x1] }
 0x169   :  { %414 = vst [vmem:[#allocation13] sm:$0x1] %v413_v55 }
 0x16a   :  { %570 = shalt.err (!%p567_p1)
}
 0x16b   :  { %s571_s21 = scalar_lea.hbm %s775_s2, 16 }
 0x16c   :  { %p572_p2 = scmp.ne.s32.totalorder %s775_s2, %s571_s21  ;;  %p575_p3 = scmp.lt.u32.totalorder %s571_s21, %s775_s2 }
 0x16e   :  { %p577_p4 = pnand %p575_p3, %p572_p2 }
 0x170   :  { %580 = shalt.err (!%p577_p4)
}
 0x171   :  { %424 = dma.vmem_to_hbm [thread:$0]  %s422_s16, 16, %s775_s2, [#allocation12]  }
 0x172   :  { %585 = dma.done.wait [#allocation12], 16  }
 0x173   :  { %586 = vsyncadd [#allocation12], 4294967280 }
 0x174   :  { %428 = vsyncpa [#allocation11], 1 }
 0x175   :  { %429 = vsyncpa [#allocation12], 1 }

</bundles_post_ra>
